<compile_context>
chip_gen: v7x
topology: tpu7x:2x2x1
jax: 0.10.0
libtpu: 0.0.40
codegen_flags: <defaults>
</compile_context>

<pallas_src>
import math

import jax
import jax.numpy as jnp
from jax import lax
from jax.experimental import pallas as pl
from jax.experimental.pallas import tpu as pltpu

# ---------------- model hyper-parameters (small, synthetic) ----------------
B = 2          # batch
S = 8          # sequence length
D = 32         # embedding_size
H = 4          # n_heads
DH = D // H    # dim per head
FFN = 64       # ffn_size
BS = B * S     # flattened rows
LN_EPS = 1e-5  # nn.LayerNorm default

# Set to jnp.bfloat16 on v6e/v7x to halve weight DMA bytes and use the native
# bf16 MXU rate (accumulation stays f32). Kept f32 here so the kernel matches
# the f32 reference tightly on every generation.
MATMUL_DTYPE = jnp.float32


def _mm(a, b):
    """MXU matmul with f32 accumulation (optionally bf16 operands)."""
    if MATMUL_DTYPE != jnp.float32:
        a = a.astype(MATMUL_DTYPE)
        b = b.astype(MATMUL_DTYPE)
    return jnp.dot(a, b, preferred_element_type=jnp.float32)


def _mm_nt(a, b):
    """a @ b.T via contraction of the last dims (no materialized transpose)."""
    if MATMUL_DTYPE != jnp.float32:
        a = a.astype(MATMUL_DTYPE)
        b = b.astype(MATMUL_DTYPE)
    return lax.dot_general(a, b, (((1,), (1,)), ((), ())),
                           preferred_element_type=jnp.float32)


def _layer_norm(x, gamma, beta):
    # x: (BS, D); biased variance, matches nn.LayerNorm
    mu = jnp.mean(x, axis=-1, keepdims=True)
    xc = x - mu
    var = jnp.mean(xc * xc, axis=-1, keepdims=True)
    inv = lax.rsqrt(var + LN_EPS)
    return xc * inv * gamma + beta


def encoder_layer_kernel(
    x_ref, mrow_ref, brow_ref,
    wqkv_ref, wo_ref, w1_ref, w2_ref, vecs_ref,
    o_ref,
    ctx_ref,  # (BS, D) f32 VMEM scratch: per-head contexts at lane offsets
):
    x = x_ref[...]                                   # (BS, D) f32

    # ---- unpack the packed small vectors (static slices: free) ----
    vecs = vecs_ref[...]                             # (8, 128)
    bqkv = vecs[0:1, 0:3 * D]
    bo = vecs[1:2, 0:D]
    g1 = vecs[2:3, 0:D]
    be1 = vecs[3:4, 0:D]
    b1 = vecs[4:5, 0:FFN]
    b2 = vecs[5:6, 0:D]
    g2 = vecs[6:7, 0:D]
    be2 = vecs[7:8, 0:D]

    # ---- build attention bias & keep mask in-kernel (VPU/XLU slack) ----
    mrow = mrow_ref[...]                             # (1, BS) 1=valid, 0=pad
    brow = brow_ref[...]                             # (1, BS) batch id (f32)
    km = jnp.broadcast_to(mrow, (BS, BS))            # key validity per column
    kb = jnp.broadcast_to(brow, (BS, BS))            # key batch id per column
    ridx = lax.broadcasted_iota(jnp.int32, (BS, BS), 0)
    cidx = lax.broadcasted_iota(jnp.int32, (BS, BS), 1)
    diag = ridx == cidx
    # query-side (per-row) values via diagonal extraction + row reduce
    qb_col = jnp.sum(jnp.where(diag, kb, jnp.float32(0.0)),
                     axis=1, keepdims=True)          # (BS, 1) query batch id
    keep_col = jnp.sum(jnp.where(diag, km, jnp.float32(0.0)),
                       axis=1, keepdims=True)        # (BS, 1) query validity
    same_batch = qb_col == kb                        # (BS, BS)
    allow = jnp.logical_and(same_batch, km > jnp.float32(0.0))
    bias2d = jnp.where(allow, jnp.float32(0.0), jnp.float32(-1e20))

    # ---- fused QKV projection ----
    qkv = _mm(x, wqkv_ref[...]) + bqkv               # (BS, 3D)
    q = qkv[:, 0:D] * jnp.float32(1.0 / math.sqrt(DH))   # scale folded into q
    k = qkv[:, D:2 * D]
    v = qkv[:, 2 * D:3 * D]

    # ---- multi-head self-attention (heads statically unrolled) ----
    for h in range(H):
        c0 = h * DH
        qh = q[:, c0:c0 + DH]                        # (BS, DH)
        kh = k[:, c0:c0 + DH]
        vh = v[:, c0:c0 + DH]
        scores = _mm_nt(qh, kh) + bias2d             # (BS, BS)
        scores = scores - jnp.max(scores, axis=-1, keepdims=True)
        e = jnp.exp(scores)
        probs = e / jnp.sum(e, axis=-1, keepdims=True)   # exact divide
        ctx_ref[:, c0:c0 + DH] = _mm(probs, vh)      # lane-offset scratch write

    # single output projection over all heads
    attn = _mm(ctx_ref[...], wo_ref[...]) + bo       # (BS, D)

    # residual + LayerNorm1
    x1 = _layer_norm(x + attn, g1, be1)

    # ---- FFN ----
    hdn = jnp.maximum(_mm(x1, w1_ref[...]) + b1, jnp.float32(0.0))
    ffn = _mm(hdn, w2_ref[...]) + b2

    # residual + LayerNorm2 + final padding-mask multiply
    x2 = _layer_norm(x1 + ffn, g2, be2)
    o_ref[...] = (x2 * keep_col).astype(o_ref.dtype)


def _full_spec(shape):
    nd = len(shape)

    def idx():                                       # grid is (): zero args
        return (0,) * nd

    return pl.BlockSpec(shape, idx)


_COST = pl.CostEstimate(
    flops=(2 * BS * D * 3 * D            # fused QKV
           + H * 2 * (2 * BS * BS * DH)  # per-head scores + context
           + 2 * BS * D * D              # output projection
           + 2 * BS * D * FFN            # FFN lin1
           + 2 * BS * FFN * D),          # FFN lin2
    transcendentals=H * BS * BS + 2 * BS,           # softmax exp + LN rsqrt
    bytes_accessed=4 * (2 * BS * D + 2 * BS         # x, out, mask, batch ids
                        + D * 3 * D + D * D + D * FFN + FFN * D   # weights
                        + 8 * 128),                 # packed small vectors
)


def prepare_params(p):
    """One-time weight fusion/packing (done at init, not per forward call)."""
    wqkv = jnp.concatenate([p["wq"], p["wk"], p["wv"]], axis=1)      # (D, 3D)
    bqkv = jnp.concatenate([p["bq"], p["bk"], p["bv"]], axis=1)[0]   # (3D,)
    vecs = jnp.zeros((8, 128), jnp.float32)
    vecs = vecs.at[0, 0:3 * D].set(bqkv)
    vecs = vecs.at[1, 0:D].set(p["bo"][0])
    vecs = vecs.at[2, 0:D].set(p["g1"][0])
    vecs = vecs.at[3, 0:D].set(p["be1"][0])
    vecs = vecs.at[4, 0:FFN].set(p["b1"][0])
    vecs = vecs.at[5, 0:D].set(p["b2"][0])
    vecs = vecs.at[6, 0:D].set(p["g2"][0])
    vecs = vecs.at[7, 0:D].set(p["be2"][0])
    # static batch-id row for the flattened (B*S) layout, prepared once
    brow = jnp.repeat(jnp.arange(B, dtype=jnp.float32), S).reshape(1, BS)
    return {"wqkv": wqkv, "wo": p["wo"], "w1": p["w1"], "w2": p["w2"],
            "vecs": vecs, "brow": brow}


def transformer_encoder_layer(x, mask, prep):
    """x: (B, S, D) float32; mask: (B, S) (0/1). Returns (B, S, D)."""
    x_flat = x.reshape(BS, D)
    mrow = mask.astype(jnp.float32).reshape(1, BS)

    inputs = (x_flat, mrow, prep["brow"], prep["wqkv"], prep["wo"],
              prep["w1"], prep["w2"], prep["vecs"])

    fn = pl.pallas_call(
        encoder_layer_kernel,
        out_shape=jax.ShapeDtypeStruct((BS, D), jnp.float32),
        in_specs=[_full_spec(a.shape) for a in inputs],
        out_specs=_full_spec((BS, D)),
        scratch_shapes=[pltpu.VMEM((BS, D), jnp.float32)],
        cost_estimate=_COST,
    )
    out = fn(*inputs)
    return out.reshape(B, S, D)


# ---------------- pure-JAX reference (for correctness check) ----------------
def reference(x, mask, p):
    mask_f = mask.astype(jnp.float32)

    with jax.default_matmul_precision("float32"):
        def mha(x):
            q = x @ p["wq"] + p["bq"][0]
            k = x @ p["wk"] + p["bk"][0]
            v = x @ p["wv"] + p["bv"][0]

            def split(t):  # (B,S,D) -> (B,H,S,DH)
                return t.reshape(B, S, H, DH).transpose(0, 2, 1, 3)
            q, k, v = split(q), split(k), split(v)
            scores = jnp.einsum("bhqd,bhkd->bhqk", q, k)
            keymask = (mask_f == 0)[:, None, None, :]
            scores = jnp.where(keymask, -1e20, scores) / math.sqrt(DH)
            probs = jax.nn.softmax(scores, axis=-1)
            a = jnp.einsum("bhqk,bhkd->bhqd", probs, v)
            a = a.transpose(0, 2, 1, 3).reshape(B, S, D)
            return a @ p["wo"] + p["bo"][0]

        def ln(x, g, b):
            mu = x.mean(-1, keepdims=True)
            var = ((x - mu) ** 2).mean(-1, keepdims=True)
            return (x - mu) / jnp.sqrt(var + LN_EPS) * g[0] + b[0]

        x = x + mha(x)
        x = ln(x, p["g1"], p["be1"])
        x = x + (jnp.maximum(x @ p["w1"] + p["b1"][0], 0.0) @ p["w2"]
                 + p["b2"][0])
        x = ln(x, p["g2"], p["be2"])
        return x * mask_f[:, :, None]


def init_params(key):
    ks = jax.random.split(key, 12)

    def xavier(k, fan_in, fan_out, normal=True):
        if normal:
            std = math.sqrt(2.0 / (fan_in + fan_out))
            return std * jax.random.normal(k, (fan_in, fan_out), jnp.float32)
        a = math.sqrt(6.0 / (fan_in + fan_out))
        return jax.random.uniform(k, (fan_in, fan_out), jnp.float32, -a, a)

    # weights stored already transposed: (in, out)
    p = {
        "wq": xavier(ks[0], D, D), "bq": 0.02 * jax.random.normal(ks[1], (1, D)),
        "wk": xavier(ks[2], D, D), "bk": 0.02 * jax.random.normal(ks[3], (1, D)),
        "wv": xavier(ks[4], D, D), "bv": 0.02 * jax.random.normal(ks[5], (1, D)),
        "wo": xavier(ks[6], D, D), "bo": 0.02 * jax.random.normal(ks[7], (1, D)),
        "g1": jnp.ones((1, D), jnp.float32), "be1": jnp.zeros((1, D), jnp.float32),
        "w1": xavier(ks[8], D, FFN, normal=False),
        "b1": 0.02 * jax.random.normal(ks[9], (1, FFN)),
        "w2": xavier(ks[10], FFN, D, normal=False),
        "b2": 0.02 * jax.random.normal(ks[11], (1, D)),
        "g2": jnp.ones((1, D), jnp.float32), "be2": jnp.zeros((1, D), jnp.float32),
    }
    return p


if __name__ == "__main__":
    key = jax.random.PRNGKey(0)
    kx, kp = jax.random.split(key)
    x = jax.random.normal(kx, (B, S, D), jnp.float32)
    # padding mask: batch 0 fully valid, batch 1 has 5 valid tokens
    lengths = jnp.array([S, 5])
    mask = (jnp.arange(S)[None, :] < lengths[:, None]).astype(jnp.int32)  # (B, S)

    params = init_params(kp)
    prep = prepare_params(params)          # one-time fusion/packing

    out = transformer_encoder_layer(x, mask, prep)
    out = jax.block_until_ready(out)

    ref = reference(x, mask, params)
    assert out.shape == (B, S, D)
    err = jnp.max(jnp.abs(out - ref))
    # With the exact softmax divide the observed error is ~1e-6; 5e-3 leaves
    # headroom for MXU f32-pass rounding differences on compiled hardware.
    assert jnp.allclose(out, ref, atol=5e-3, rtol=5e-3), f"max abs err {err}"

    print("KERNEL_OK")
</pallas_src>

<mosaic_0001>
module attributes {stable_mosaic.version = 11 : i64} {
  func.func @encoder_layer_kernel(%arg0: memref<16x32xf32, #tpu.memory_space<vmem>>, %arg1: memref<1x16xf32, #tpu.memory_space<vmem>>, %arg2: memref<1x16xf32, #tpu.memory_space<vmem>>, %arg3: memref<32x96xf32, #tpu.memory_space<vmem>>, %arg4: memref<32x32xf32, #tpu.memory_space<vmem>>, %arg5: memref<32x64xf32, #tpu.memory_space<vmem>>, %arg6: memref<64x32xf32, #tpu.memory_space<vmem>>, %arg7: memref<8x128xf32, #tpu.memory_space<vmem>>, %arg8: memref<16x32xf32, #tpu.memory_space<vmem>>, %arg9: memref<16x32xf32, #tpu.memory_space<vmem>>) attributes {dimension_semantics = [], scalar_prefetch = 0 : i64, scratch_operands = 1 : i64, tpu.core_type = #tpu.core_type<tc>} {
    %c0 = arith.constant 0 : index
    %c0_0 = arith.constant 0 : index
    %0 = vector.load %arg0[%c0, %c0_0] : memref<16x32xf32, #tpu.memory_space<vmem>>, vector<16x32xf32>
    %c0_1 = arith.constant 0 : index
    %c0_2 = arith.constant 0 : index
    %1 = vector.load %arg7[%c0_1, %c0_2] : memref<8x128xf32, #tpu.memory_space<vmem>>, vector<8x128xf32>
    %2 = vector.extract_strided_slice %1 {offsets = [0, 0], sizes = [1, 96], strides = [1, 1]} : vector<8x128xf32> to vector<1x96xf32>
    %3 = vector.extract_strided_slice %1 {offsets = [1, 0], sizes = [1, 32], strides = [1, 1]} : vector<8x128xf32> to vector<1x32xf32>
    %4 = vector.extract_strided_slice %1 {offsets = [2, 0], sizes = [1, 32], strides = [1, 1]} : vector<8x128xf32> to vector<1x32xf32>
    %5 = vector.extract_strided_slice %1 {offsets = [3, 0], sizes = [1, 32], strides = [1, 1]} : vector<8x128xf32> to vector<1x32xf32>
    %6 = vector.extract_strided_slice %1 {offsets = [4, 0], sizes = [1, 64], strides = [1, 1]} : vector<8x128xf32> to vector<1x64xf32>
    %7 = vector.extract_strided_slice %1 {offsets = [5, 0], sizes = [1, 32], strides = [1, 1]} : vector<8x128xf32> to vector<1x32xf32>
    %8 = vector.extract_strided_slice %1 {offsets = [6, 0], sizes = [1, 32], strides = [1, 1]} : vector<8x128xf32> to vector<1x32xf32>
    %9 = vector.extract_strided_slice %1 {offsets = [7, 0], sizes = [1, 32], strides = [1, 1]} : vector<8x128xf32> to vector<1x32xf32>
    %c0_3 = arith.constant 0 : index
    %c0_4 = arith.constant 0 : index
    %10 = vector.load %arg1[%c0_3, %c0_4] : memref<1x16xf32, #tpu.memory_space<vmem>>, vector<1x16xf32>
    %c0_5 = arith.constant 0 : index
    %c0_6 = arith.constant 0 : index
    %11 = vector.load %arg2[%c0_5, %c0_6] : memref<1x16xf32, #tpu.memory_space<vmem>>, vector<1x16xf32>
    %12 = vector.shape_cast %10 : vector<1x16xf32> to vector<1x16xf32>
    %13 = vector.broadcast %12 : vector<1x16xf32> to vector<16x16xf32>
    %14 = vector.shape_cast %11 : vector<1x16xf32> to vector<1x16xf32>
    %15 = vector.broadcast %14 : vector<1x16xf32> to vector<16x16xf32>
    %16 = tpu.iota {dimensions = array<i32: 0>} : vector<16x16xi32>
    %17 = tpu.iota {dimensions = array<i32: 1>} : vector<16x16xi32>
    %18 = arith.cmpi eq, %16, %17 : vector<16x16xi32>
    %cst = arith.constant 0.000000e+00 : f32
    %19 = vector.broadcast %cst : f32 to vector<16x16xf32>
    %20 = arith.select %18, %15, %19 : vector<16x16xi1>, vector<16x16xf32>
    %cst_7 = arith.constant dense<0.000000e+00> : vector<16xf32>
    %21 = vector.multi_reduction <add>, %20, %cst_7 [1] : vector<16x16xf32> to vector<16xf32>
    %22 = vector.shape_cast %21 : vector<16xf32> to vector<16x1xf32>
    %cst_8 = arith.constant 0.000000e+00 : f32
    %23 = vector.broadcast %cst_8 : f32 to vector<16x16xf32>
    %24 = arith.select %18, %13, %23 : vector<16x16xi1>, vector<16x16xf32>
    %cst_9 = arith.constant dense<0.000000e+00> : vector<16xf32>
    %25 = vector.multi_reduction <add>, %24, %cst_9 [1] : vector<16x16xf32> to vector<16xf32>
    %26 = vector.shape_cast %25 : vector<16xf32> to vector<16x1xf32>
    %27 = vector.broadcast %22 : vector<16x1xf32> to vector<16x16xf32>
    %28 = arith.cmpf oeq, %27, %15 : vector<16x16xf32>
    %cst_10 = arith.constant 0.000000e+00 : f32
    %29 = vector.broadcast %cst_10 : f32 to vector<16x16xf32>
    %30 = arith.cmpf ogt, %13, %29 : vector<16x16xf32>
    %31 = arith.andi %28, %30 : vector<16x16xi1>
    %cst_11 = arith.constant 0.000000e+00 : f32
    %cst_12 = arith.constant -1.000000e+20 : f32
    %32 = vector.broadcast %cst_11 : f32 to vector<16x16xf32>
    %33 = vector.broadcast %cst_12 : f32 to vector<16x16xf32>
    %34 = arith.select %31, %32, %33 : vector<16x16xi1>, vector<16x16xf32>
    %c0_13 = arith.constant 0 : index
    %c0_14 = arith.constant 0 : index
    %35 = vector.load %arg3[%c0_13, %c0_14] : memref<32x96xf32, #tpu.memory_space<vmem>>, vector<32x96xf32>
    %cst_15 = arith.constant dense<0.000000e+00> : vector<16x96xf32>
    %36 = tpu.matmul %0, %35, %cst_15 {dimension_numbers = #tpu.dot_dimension_numbers<[1], [0], [0], [1], [0, 0, 1, 1], [], []>} : vector<16x32xf32>, vector<32x96xf32>, vector<16x96xf32> -> vector<16x96xf32>
    %37 = vector.broadcast %2 : vector<1x96xf32> to vector<16x96xf32>
    %38 = arith.addf %36, %37 : vector<16x96xf32>
    %39 = vector.extract_strided_slice %38 {offsets = [0, 0], sizes = [16, 32], strides = [1, 1]} : vector<16x96xf32> to vector<16x32xf32>
    %cst_16 = arith.constant 0.353553385 : f32
    %40 = vector.broadcast %cst_16 : f32 to vector<16x32xf32>
    %41 = arith.mulf %39, %40 : vector<16x32xf32>
    %42 = vector.extract_strided_slice %38 {offsets = [0, 32], sizes = [16, 32], strides = [1, 1]} : vector<16x96xf32> to vector<16x32xf32>
    %43 = vector.extract_strided_slice %38 {offsets = [0, 64], sizes = [16, 32], strides = [1, 1]} : vector<16x96xf32> to vector<16x32xf32>
    %44 = vector.extract_strided_slice %41 {offsets = [0, 0], sizes = [16, 8], strides = [1, 1]} : vector<16x32xf32> to vector<16x8xf32>
    %45 = vector.extract_strided_slice %42 {offsets = [0, 0], sizes = [16, 8], strides = [1, 1]} : vector<16x32xf32> to vector<16x8xf32>
    %46 = vector.extract_strided_slice %43 {offsets = [0, 0], sizes = [16, 8], strides = [1, 1]} : vector<16x32xf32> to vector<16x8xf32>
    %cst_17 = arith.constant dense<0.000000e+00> : vector<16x16xf32>
    %47 = tpu.matmul %44, %45, %cst_17 {dimension_numbers = #tpu.dot_dimension_numbers<[1], [1], [0], [0], [0, 0, 1, 0], [], []>} : vector<16x8xf32>, vector<16x8xf32>, vector<16x16xf32> -> vector<16x16xf32>
    %48 = arith.addf %47, %34 : vector<16x16xf32>
    %cst_18 = arith.constant dense<0xFF800000> : vector<16xf32>
    %49 = vector.multi_reduction <maximumf>, %48, %cst_18 [1] : vector<16x16xf32> to vector<16xf32>
    %50 = vector.shape_cast %49 : vector<16xf32> to vector<16x1xf32>
    %51 = vector.broadcast %50 : vector<16x1xf32> to vector<16x16xf32>
    %52 = arith.subf %48, %51 : vector<16x16xf32>
    %53 = math.exp %52 : vector<16x16xf32>
    %cst_19 = arith.constant dense<0.000000e+00> : vector<16xf32>
    %54 = vector.multi_reduction <add>, %53, %cst_19 [1] : vector<16x16xf32> to vector<16xf32>
    %55 = vector.shape_cast %54 : vector<16xf32> to vector<16x1xf32>
    %56 = vector.broadcast %55 : vector<16x1xf32> to vector<16x16xf32>
    %57 = arith.divf %53, %56 : vector<16x16xf32>
    %cst_20 = arith.constant dense<0.000000e+00> : vector<16x8xf32>
    %58 = tpu.matmul %57, %46, %cst_20 {dimension_numbers = #tpu.dot_dimension_numbers<[1], [0], [0], [1], [0, 0, 1, 1], [], []>} : vector<16x16xf32>, vector<16x8xf32>, vector<16x8xf32> -> vector<16x8xf32>
    %c0_21 = arith.constant 0 : index
    %c0_22 = arith.constant 0 : index
    %59 = vector.load %arg9[%c0_21, %c0_22] : memref<16x32xf32, #tpu.memory_space<vmem>>, vector<16x8xf32>
    tpu.vector_store %arg9[%c0_21, %c0_22], %58 {strides = array<i32>} : memref<16x32xf32, #tpu.memory_space<vmem>>, vector<16x8xf32>,
    %60 = vector.extract_strided_slice %41 {offsets = [0, 8], sizes = [16, 8], strides = [1, 1]} : vector<16x32xf32> to vector<16x8xf32>
    %61 = vector.extract_strided_slice %42 {offsets = [0, 8], sizes = [16, 8], strides = [1, 1]} : vector<16x32xf32> to vector<16x8xf32>
    %62 = vector.extract_strided_slice %43 {offsets = [0, 8], sizes = [16, 8], strides = [1, 1]} : vector<16x32xf32> to vector<16x8xf32>
    %cst_23 = arith.constant dense<0.000000e+00> : vector<16x16xf32>
    %63 = tpu.matmul %60, %61, %cst_23 {dimension_numbers = #tpu.dot_dimension_numbers<[1], [1], [0], [0], [0, 0, 1, 0], [], []>} : vector<16x8xf32>, vector<16x8xf32>, vector<16x16xf32> -> vector<16x16xf32>
    %64 = arith.addf %63, %34 : vector<16x16xf32>
    %cst_24 = arith.constant dense<0xFF800000> : vector<16xf32>
    %65 = vector.multi_reduction <maximumf>, %64, %cst_24 [1] : vector<16x16xf32> to vector<16xf32>
    %66 = vector.shape_cast %65 : vector<16xf32> to vector<16x1xf32>
    %67 = vector.broadcast %66 : vector<16x1xf32> to vector<16x16xf32>
    %68 = arith.subf %64, %67 : vector<16x16xf32>
    %69 = math.exp %68 : vector<16x16xf32>
    %cst_25 = arith.constant dense<0.000000e+00> : vector<16xf32>
    %70 = vector.multi_reduction <add>, %69, %cst_25 [1] : vector<16x16xf32> to vector<16xf32>
    %71 = vector.shape_cast %70 : vector<16xf32> to vector<16x1xf32>
    %72 = vector.broadcast %71 : vector<16x1xf32> to vector<16x16xf32>
    %73 = arith.divf %69, %72 : vector<16x16xf32>
    %cst_26 = arith.constant dense<0.000000e+00> : vector<16x8xf32>
    %74 = tpu.matmul %73, %62, %cst_26 {dimension_numbers = #tpu.dot_dimension_numbers<[1], [0], [0], [1], [0, 0, 1, 1], [], []>} : vector<16x16xf32>, vector<16x8xf32>, vector<16x8xf32> -> vector<16x8xf32>
    %c0_27 = arith.constant 0 : index
    %c8 = arith.constant 8 : index
    %75 = vector.load %arg9[%c0_27, %c8] : memref<16x32xf32, #tpu.memory_space<vmem>>, vector<16x8xf32>
    tpu.vector_store %arg9[%c0_27, %c8], %74 {strides = array<i32>} : memref<16x32xf32, #tpu.memory_space<vmem>>, vector<16x8xf32>,
    %76 = vector.extract_strided_slice %41 {offsets = [0, 16], sizes = [16, 8], strides = [1, 1]} : vector<16x32xf32> to vector<16x8xf32>
    %77 = vector.extract_strided_slice %42 {offsets = [0, 16], sizes = [16, 8], strides = [1, 1]} : vector<16x32xf32> to vector<16x8xf32>
    %78 = vector.extract_strided_slice %43 {offsets = [0, 16], sizes = [16, 8], strides = [1, 1]} : vector<16x32xf32> to vector<16x8xf32>
    %cst_28 = arith.constant dense<0.000000e+00> : vector<16x16xf32>
    %79 = tpu.matmul %76, %77, %cst_28 {dimension_numbers = #tpu.dot_dimension_numbers<[1], [1], [0], [0], [0, 0, 1, 0], [], []>} : vector<16x8xf32>, vector<16x8xf32>, vector<16x16xf32> -> vector<16x16xf32>
    %80 = arith.addf %79, %34 : vector<16x16xf32>
    %cst_29 = arith.constant dense<0xFF800000> : vector<16xf32>
    %81 = vector.multi_reduction <maximumf>, %80, %cst_29 [1] : vector<16x16xf32> to vector<16xf32>
    %82 = vector.shape_cast %81 : vector<16xf32> to vector<16x1xf32>
    %83 = vector.broadcast %82 : vector<16x1xf32> to vector<16x16xf32>
    %84 = arith.subf %80, %83 : vector<16x16xf32>
    %85 = math.exp %84 : vector<16x16xf32>
    %cst_30 = arith.constant dense<0.000000e+00> : vector<16xf32>
    %86 = vector.multi_reduction <add>, %85, %cst_30 [1] : vector<16x16xf32> to vector<16xf32>
    %87 = vector.shape_cast %86 : vector<16xf32> to vector<16x1xf32>
    %88 = vector.broadcast %87 : vector<16x1xf32> to vector<16x16xf32>
    %89 = arith.divf %85, %88 : vector<16x16xf32>
    %cst_31 = arith.constant dense<0.000000e+00> : vector<16x8xf32>
    %90 = tpu.matmul %89, %78, %cst_31 {dimension_numbers = #tpu.dot_dimension_numbers<[1], [0], [0], [1], [0, 0, 1, 1], [], []>} : vector<16x16xf32>, vector<16x8xf32>, vector<16x8xf32> -> vector<16x8xf32>
    %c0_32 = arith.constant 0 : index
    %c16 = arith.constant 16 : index
    %91 = vector.load %arg9[%c0_32, %c16] : memref<16x32xf32, #tpu.memory_space<vmem>>, vector<16x8xf32>
    tpu.vector_store %arg9[%c0_32, %c16], %90 {strides = array<i32>} : memref<16x32xf32, #tpu.memory_space<vmem>>, vector<16x8xf32>,
    %92 = vector.extract_strided_slice %41 {offsets = [0, 24], sizes = [16, 8], strides = [1, 1]} : vector<16x32xf32> to vector<16x8xf32>
    %93 = vector.extract_strided_slice %42 {offsets = [0, 24], sizes = [16, 8], strides = [1, 1]} : vector<16x32xf32> to vector<16x8xf32>
    %94 = vector.extract_strided_slice %43 {offsets = [0, 24], sizes = [16, 8], strides = [1, 1]} : vector<16x32xf32> to vector<16x8xf32>
    %cst_33 = arith.constant dense<0.000000e+00> : vector<16x16xf32>
    %95 = tpu.matmul %92, %93, %cst_33 {dimension_numbers = #tpu.dot_dimension_numbers<[1], [1], [0], [0], [0, 0, 1, 0], [], []>} : vector<16x8xf32>, vector<16x8xf32>, vector<16x16xf32> -> vector<16x16xf32>
    %96 = arith.addf %95, %34 : vector<16x16xf32>
    %cst_34 = arith.constant dense<0xFF800000> : vector<16xf32>
    %97 = vector.multi_reduction <maximumf>, %96, %cst_34 [1] : vector<16x16xf32> to vector<16xf32>
    %98 = vector.shape_cast %97 : vector<16xf32> to vector<16x1xf32>
    %99 = vector.broadcast %98 : vector<16x1xf32> to vector<16x16xf32>
    %100 = arith.subf %96, %99 : vector<16x16xf32>
    %101 = math.exp %100 : vector<16x16xf32>
    %cst_35 = arith.constant dense<0.000000e+00> : vector<16xf32>
    %102 = vector.multi_reduction <add>, %101, %cst_35 [1] : vector<16x16xf32> to vector<16xf32>
    %103 = vector.shape_cast %102 : vector<16xf32> to vector<16x1xf32>
    %104 = vector.broadcast %103 : vector<16x1xf32> to vector<16x16xf32>
    %105 = arith.divf %101, %104 : vector<16x16xf32>
    %cst_36 = arith.constant dense<0.000000e+00> : vector<16x8xf32>
    %106 = tpu.matmul %105, %94, %cst_36 {dimension_numbers = #tpu.dot_dimension_numbers<[1], [0], [0], [1], [0, 0, 1, 1], [], []>} : vector<16x16xf32>, vector<16x8xf32>, vector<16x8xf32> -> vector<16x8xf32>
    %c0_37 = arith.constant 0 : index
    %c24 = arith.constant 24 : index
    %107 = vector.load %arg9[%c0_37, %c24] : memref<16x32xf32, #tpu.memory_space<vmem>>, vector<16x8xf32>
    tpu.vector_store %arg9[%c0_37, %c24], %106 {strides = array<i32>} : memref<16x32xf32, #tpu.memory_space<vmem>>, vector<16x8xf32>,
    %c0_38 = arith.constant 0 : index
    %c0_39 = arith.constant 0 : index
    %108 = vector.load %arg9[%c0_38, %c0_39] : memref<16x32xf32, #tpu.memory_space<vmem>>, vector<16x32xf32>
    %c0_40 = arith.constant 0 : index
    %c0_41 = arith.constant 0 : index
    %109 = vector.load %arg4[%c0_40, %c0_41] : memref<32x32xf32, #tpu.memory_space<vmem>>, vector<32x32xf32>
    %cst_42 = arith.constant dense<0.000000e+00> : vector<16x32xf32>
    %110 = tpu.matmul %108, %109, %cst_42 {dimension_numbers = #tpu.dot_dimension_numbers<[1], [0], [0], [1], [0, 0, 1, 1], [], []>} : vector<16x32xf32>, vector<32x32xf32>, vector<16x32xf32> -> vector<16x32xf32>
    %111 = vector.broadcast %3 : vector<1x32xf32> to vector<16x32xf32>
    %112 = arith.addf %110, %111 : vector<16x32xf32>
    %113 = arith.addf %0, %112 : vector<16x32xf32>
    %cst_43 = arith.constant dense<0.000000e+00> : vector<16xf32>
    %114 = vector.multi_reduction <add>, %113, %cst_43 [1] : vector<16x32xf32> to vector<16xf32>
    %115 = vector.shape_cast %114 : vector<16xf32> to vector<16x1xf32>
    %cst_44 = arith.constant 3.200000e+01 : f32
    %116 = vector.broadcast %cst_44 : f32 to vector<16x1xf32>
    %117 = arith.divf %115, %116 : vector<16x1xf32>
    %118 = vector.broadcast %117 : vector<16x1xf32> to vector<16x32xf32>
    %119 = arith.subf %113, %118 : vector<16x32xf32>
    %120 = arith.mulf %119, %119 : vector<16x32xf32>
    %cst_45 = arith.constant dense<0.000000e+00> : vector<16xf32>
    %121 = vector.multi_reduction <add>, %120, %cst_45 [1] : vector<16x32xf32> to vector<16xf32>
    %122 = vector.shape_cast %121 : vector<16xf32> to vector<16x1xf32>
    %cst_46 = arith.constant 3.200000e+01 : f32
    %123 = vector.broadcast %cst_46 : f32 to vector<16x1xf32>
    %124 = arith.divf %122, %123 : vector<16x1xf32>
    %cst_47 = arith.constant 9.99999974E-6 : f32
    %125 = vector.broadcast %cst_47 : f32 to vector<16x1xf32>
    %126 = arith.addf %124, %125 : vector<16x1xf32>
    %127 = math.rsqrt %126 : vector<16x1xf32>
    %128 = vector.broadcast %127 : vector<16x1xf32> to vector<16x32xf32>
    %129 = arith.mulf %119, %128 : vector<16x32xf32>
    %130 = vector.broadcast %4 : vector<1x32xf32> to vector<16x32xf32>
    %131 = arith.mulf %129, %130 : vector<16x32xf32>
    %132 = vector.broadcast %5 : vector<1x32xf32> to vector<16x32xf32>
    %133 = arith.addf %131, %132 : vector<16x32xf32>
    %c0_48 = arith.constant 0 : index
    %c0_49 = arith.constant 0 : index
    %134 = vector.load %arg5[%c0_48, %c0_49] : memref<32x64xf32, #tpu.memory_space<vmem>>, vector<32x64xf32>
    %cst_50 = arith.constant dense<0.000000e+00> : vector<16x64xf32>
    %135 = tpu.matmul %133, %134, %cst_50 {dimension_numbers = #tpu.dot_dimension_numbers<[1], [0], [0], [1], [0, 0, 1, 1], [], []>} : vector<16x32xf32>, vector<32x64xf32>, vector<16x64xf32> -> vector<16x64xf32>
    %136 = vector.broadcast %6 : vector<1x64xf32> to vector<16x64xf32>
    %137 = arith.addf %135, %136 : vector<16x64xf32>
    %cst_51 = arith.constant 0.000000e+00 : f32
    %138 = vector.broadcast %cst_51 : f32 to vector<16x64xf32>
    %139 = arith.maximumf %137, %138 : vector<16x64xf32>
    %c0_52 = arith.constant 0 : index
    %c0_53 = arith.constant 0 : index
    %140 = vector.load %arg6[%c0_52, %c0_53] : memref<64x32xf32, #tpu.memory_space<vmem>>, vector<64x32xf32>
    %cst_54 = arith.constant dense<0.000000e+00> : vector<16x32xf32>
    %141 = tpu.matmul %139, %140, %cst_54 {dimension_numbers = #tpu.dot_dimension_numbers<[1], [0], [0], [1], [0, 0, 1, 1], [], []>} : vector<16x64xf32>, vector<64x32xf32>, vector<16x32xf32> -> vector<16x32xf32>
    %142 = vector.broadcast %7 : vector<1x32xf32> to vector<16x32xf32>
    %143 = arith.addf %141, %142 : vector<16x32xf32>
    %144 = arith.addf %133, %143 : vector<16x32xf32>
    %cst_55 = arith.constant dense<0.000000e+00> : vector<16xf32>
    %145 = vector.multi_reduction <add>, %144, %cst_55 [1] : vector<16x32xf32> to vector<16xf32>
    %146 = vector.shape_cast %145 : vector<16xf32> to vector<16x1xf32>
    %cst_56 = arith.constant 3.200000e+01 : f32
    %147 = vector.broadcast %cst_56 : f32 to vector<16x1xf32>
    %148 = arith.divf %146, %147 : vector<16x1xf32>
    %149 = vector.broadcast %148 : vector<16x1xf32> to vector<16x32xf32>
    %150 = arith.subf %144, %149 : vector<16x32xf32>
    %151 = arith.mulf %150, %150 : vector<16x32xf32>
    %cst_57 = arith.constant dense<0.000000e+00> : vector<16xf32>
    %152 = vector.multi_reduction <add>, %151, %cst_57 [1] : vector<16x32xf32> to vector<16xf32>
    %153 = vector.shape_cast %152 : vector<16xf32> to vector<16x1xf32>
    %cst_58 = arith.constant 3.200000e+01 : f32
    %154 = vector.broadcast %cst_58 : f32 to vector<16x1xf32>
    %155 = arith.divf %153, %154 : vector<16x1xf32>
    %cst_59 = arith.constant 9.99999974E-6 : f32
    %156 = vector.broadcast %cst_59 : f32 to vector<16x1xf32>
    %157 = arith.addf %155, %156 : vector<16x1xf32>
    %158 = math.rsqrt %157 : vector<16x1xf32>
    %159 = vector.broadcast %158 : vector<16x1xf32> to vector<16x32xf32>
    %160 = arith.mulf %150, %159 : vector<16x32xf32>
    %161 = vector.broadcast %8 : vector<1x32xf32> to vector<16x32xf32>
    %162 = arith.mulf %160, %161 : vector<16x32xf32>
    %163 = vector.broadcast %9 : vector<1x32xf32> to vector<16x32xf32>
    %164 = arith.addf %162, %163 : vector<16x32xf32>
    %165 = vector.broadcast %26 : vector<16x1xf32> to vector<16x32xf32>
    %166 = arith.mulf %164, %165 : vector<16x32xf32>
    %c0_60 = arith.constant 0 : index
    %c0_61 = arith.constant 0 : index
    %167 = vector.load %arg8[%c0_60, %c0_61] : memref<16x32xf32, #tpu.memory_space<vmem>>, vector<16x32xf32>
    tpu.vector_store %arg8[%c0_60, %c0_61], %166 {strides = array<i32>} : memref<16x32xf32, #tpu.memory_space<vmem>>, vector<16x32xf32>,
    return
  }
}

</mosaic_0001>

<bundles_post_ra>
// kernel: tpu_custom_call.1
= control target key start
LH: loop header
LB: loop body
LE: loop exit
PB: predicated region body
PF: predicated region fallthrough
CT: control target
= control target key end

     0   :  { %13 = vsyncpa [#allocation4], 0  ;;  %s2160_s0 = inlined_call_operand.hbm [shape: f32[16,32], index: 0, kind: input, shape index: {}]   ;;  %s2161_s1 = inlined_call_operand.vmem [shape: f32[1,16], index: 1, kind: input, shape index: {}]   ;;  %s2162_s2 = inlined_call_operand.vmem [shape: f32[1,16], index: 2, kind: input, shape index: {}]   ;;  %s2163_s3 = inlined_call_operand.vmem [shape: f32[32,96], index: 3, kind: input, shape index: {}]   ;;  %s2164_s4 = inlined_call_operand.vmem [shape: f32[32,32], index: 4, kind: input, shape index: {}]   ;;  %s2165_s5 = inlined_call_operand.vmem [shape: f32[32,64], index: 5, kind: input, shape index: {}]   ;;  %s2166_s6 = inlined_call_operand.vmem [shape: f32[64,32], index: 6, kind: input, shape index: {}]   ;;  %s2167_s7 = inlined_call_operand.vmem [shape: f32[8,128], index: 7, kind: input, shape index: {}]   ;;  %s2168_s8 = inlined_call_operand.hbm [shape: f32[16,32], index: 8, kind: output, shape index: {}]  }
   0x1   :  { %14 = vsyncpa [#allocation5], 0  ;;  %s1826_s27 = smov [#allocation3]   ;;  %s1778_s9 = scalar_lea.hbm %s2160_s0, 256 }
   0x2   :  { %s20_s28 = sshll.u32 %s1826_s27, 4  ;;  %p1779_p0 = scmp.ne.s32.totalorder %s2160_s0, %s1778_s9  ;;  %s21_s28 = int_to_ptr.vmem [resolvable:$true] %s20_s28 }
   0x3   :  { %p1782_p1 = scmp.lt.u32.totalorder %s1778_s9, %s2160_s0 }
   0x5   :  { %p1784_p2 = pnand %p1782_p1, %p1779_p0 }
   0x7   :  { %1787 = shalt.err (!%p1784_p2)
}
   0x8   :  { %s1788_s14 = scalar_lea.vmem %s21_s28, 256  ;;  %p1793_p4 = scmp.lt.s32.totalorder %s21_s28, %s21_s28 }
   0x9   :  { %p1789_p3 = scmp.ne.s32.totalorder %s21_s28, %s1788_s14  ;;  %p1794_p5 = scmp.lt.s32.totalorder %s1788_s14, %s1788_s14 }
   0xb   :  { %p1795_p6 = por %p1794_p5, %p1793_p4 }
   0xd   :  { %p1796_p7 = pnand %p1795_p6, %p1789_p3 }
   0xf   :  { %1799 = shalt.err (!%p1796_p7)
}
  0x10   :  { %s1827_s15 = smov 128   ;;  %s1828_s16 = smov 8  }
  0x11   :  { %26 = dma.hbm_to_vmem [thread:$0]  %s2160_s0, 256, %s21_s28, [#allocation4], %s1827_s15, %s1827_s15, %s1828_s16  }
  0x12   :  { %1822 = dma.done.wait [#allocation4], 256  }
  0x13   :  { %1823 = vsyncadd [#allocation4], 4294967040  ;;  %vm100_vm0 = vcmask 261120   ;;  %v92_v0 = vld [vmem:[%s2163_s3] sm:$0xff]  ;;  %v93_v1 = vld [vmem:[%s2163_s3 + $0x8] sm:$0xff]  ;;  %v61_v8 = vlaneseq  ;;  %vm190_vm1 = vcmask 64512  }
  0x14   :  { %v94_v2 = vld [vmem:[%s2163_s3 + $0x10] sm:$0xff]  ;;  %v1600_v3 = vpack.c.bf16 %v93_v1, %v92_v0  ;;  %v95_v4 = vld [vmem:[%s2163_s3 + $0x18] sm:$0xff]  ;;  %v1930_v11 = vld [vmem:[%s2167_s7] sm:$0xff]  ;;  %s1829_s27 = smov 96   ;;  %s1830_s28 = smov 120   ;;  %vm70_vm3 = vcmask 130048  }
  0x15   :  { %v1916_v5 = vld [vmem:[#allocation3] sm:$0xff]  ;;  %v1604_v6 = vpack.c.bf16 %v95_v4, %v94_v2  ;;  %v1920_v7 = vld [vmem:[#allocation3 + $0x8] sm:$0xff]  ;;  %v1924_v9 = vshrl.u32 %v61_v8, 7  ;;  %s1831_s7 = smov 88   ;;  %v1945_v20 = vand.u32 127, %v61_v8  ;;  %vm1967_vm5 = vmpackc.low %vm190_vm1, %vm190_vm1  ;;  %s1834_s10 = smov 80  }
  0x16   :  { %1500 = vmatprep.mubr.msk.f32.mxu1 %vm100_vm0, %v1916_v5  ;;  %1601 = vmatprep.subr.bf16.mxu1 %v1600_v3  ;;  %v1399_v21 = vld [vmem:[%s2162_s2] ss:$0 sm:$0xff]  ;;  %v1832_v41 = vmov -1e+20   ;;  %s1835_s11 = smov 56   ;;  %s1836_s12 = smov 112  }
  0x17   :  { %1603 = vmatpush3.bf16.msra.mxu1 %v1600_v3  ;;  %v98_v10 = vsub.s32 0, %v1924_v9  ;;  %vm66_vm2 = vcmp.eq.s32.totalorder %v1924_v9, %v1945_v20  ;;  %v1953_v22 = vadd.s32 8, %v1924_v9  ;;  %v1986_v38 = vld [vmem:[%s2161_s1] ss:$0 sm:$0xff]  ;;  %s1833_s1 = smov 64   ;;  %s1837_s13 = smov 72  }
  0x18   :  { %1605 = vmatprep.subr.bf16.mxu1 %v1604_v6  ;;  %v68_v23 = vsel %vm66_vm2, %v1399_v21, 0.0  ;;  %vm87_vm6 = vcmp.gt.f32.partialorder %v1986_v38, 0.0  ;;  %s1838_s14 = smov 104   ;;  %s1839_s17 = smov 48   ;;  %vm595_vm11 = vcmask 130112   ;;  %vm806_vm12 = vcmask 195712  }
  0x19   :  { %v99_v12 = vrot.slane %v1930_v11, %v98_v10  ;;  %vm67_vm4 = vcmp.eq.s32.totalorder %v1953_v22, %v1945_v20  ;;  %v71_v24 = vsel %vm70_vm3, %v68_v23, 0.0  ;;  %s1840_s18 = smov 40   ;;  %s1841_s19 = smov 16   ;;  %vm1017_vm13 = vcmask 261312  }
  0x1a   :  { %v69_v25 = vsel %vm67_vm4, %v1399_v21, 0.0  ;;  %s1842_s3 = smov 24   ;;  %vm1255_vm14 = vcmask 523264   ;;  %v1367_v20 = vsub.s32 6, %v1924_v9 }
  0x1b   :  { %1607 = vmatpush3.bf16.msra.mxu1 %v1604_v6  ;;  %v74_v26 = vsel %vm70_vm3, %v69_v25, 0.0 }
  0x1e   :  { %1501 = vmatmul.mubr.msk.f32.vlgmr.msra.gmra.mrb[0].mxu1 %vm100_vm0, %v1920_v7 }
  0xf1   :  { %v1502_v13 = vpop.f32.mrb[0].mxu1 }
  0xf2   :  { %v179_v14 = vadd.f32 %v1502_v13, %v99_v12  ;;  %v173_v15 = vpop.f32.mrb[1].mxu1 }
  0xf3   :  { %v174_v16 = vadd.f32 %v173_v15, %v99_v12 }
  0xf4   :  { %v1941_v19 = vmul.f32 0.35355338, %v179_v14 }
  0xf5   :  { %v1933_v17 = vpack.i.bf16 %v179_v14, %v174_v16  ;;  %v1935_v18 = vmul.f32 0.35355338, %v174_v16 }
  0xf7   :  { %1699 = vrot.lane.b32.xlu0 %v1933_v17, %s1829_s27  ;;  %387 = vrot.lane.b32.xlu1 %v1935_v18, %s1830_s28 }
  0xf8   :  { %1507 = vmatprep.mubr.msk.f32.mxu1 %vm190_vm1, %v1935_v18 }
  0xfb   :  { %1704 = vrot.lane.b32.xlu0 %v1933_v17, %s1831_s7  ;;  %389 = vrot.lane.b32.xlu1 %v1941_v19, %s1830_s28 }
 0x11a   :  { %72 = vadd.xlane.f32.xlu0 %v71_v24 }
 0x11f   :  { %75 = vadd.xlane.f32.xlu1 %v74_v26 }
 0x169   :  { %v1700_v27 = vpop.permute.xlu0 %1699  ;;  %v388_v36 = vpop.permute.xlu1 %387 }
 0x16a   :  { %v1702_v28 = vunpack.i.h.bf16 %v1700_v27  ;;  %v1701_v29 = vunpack.i.l.bf16 %v1700_v27 }
 0x16c   :  { %v1608_v31 = vpack.c.bf16 %v1702_v28, %v1701_v29 }
 0x16d   :  { %v1705_v32 = vpop.permute.xlu0 %1704  ;;  %v390_v37 = vpop.permute.xlu1 %389 }
 0x16e   :  { %v1707_v33 = vunpack.i.h.bf16 %v1705_v32  ;;  %v1706_v34 = vunpack.i.l.bf16 %v1705_v32  ;;  %1610 = vmatprep.subr.msk.bf16.mxu1 %vm1967_vm5, %v1608_v31 }
 0x16f   :  { %1613 = vmatpush3.bf16.xpose.msk.msra.mxu1 %vm1967_vm5, %v1608_v31 }
 0x170   :  { %v1618_v35 = vpack.c.bf16 %v1707_v33, %v1706_v34 }
 0x172   :  { %1620 = vmatprep.subr.msk.bf16.mxu1 %vm1967_vm5, %v1618_v35 }
 0x176   :  { %1508 = vmatmul.mubr.msk.f32.vlgmr.msra.gmra.mrb[2].mxu1 %vm190_vm1, %v1941_v19 }
 0x177   :  { %1623 = vmatpush3.bf16.xpose.msk.msra.mxu1 %vm1967_vm5, %v1618_v35  ;;  %1521 = vmatprep.mubr.msk.f32.mxu1 %vm190_vm1, %v388_v36 }
 0x17e   :  { %1522 = vmatmul.mubr.msk.f32.vlgmr.msra.gmra.mrb[4].mxu1 %vm190_vm1, %v390_v37 }
 0x1a7   :  { %v73_v39 = vpop.xlane.xlu0 %72 }
 0x1a8   :  { %vm85_vm7 = vcmp.eq.f32.partialorder %v73_v39, %v1399_v21 }
 0x1a9   :  { %vm88_vm9 = vmand %vm85_vm7, %vm87_vm6 }
 0x1aa   :  { %v1989_v42 = vsel %vm88_vm9, 0.0, %v1832_v41 }
 0x1ac   :  { %v76_v40 = vpop.xlane.xlu1 %75 }
 0x1ad   :  { %vm86_vm8 = vcmp.eq.f32.partialorder %v76_v40, %v1399_v21 }
 0x1ae   :  { %vm89_vm10 = vmand %vm86_vm8, %vm87_vm6 }
 0x1af   :  { %v1991_v44 = vsel %vm89_vm10, 0.0, %v1832_v41 }
 0x249   :  { %v1509_v43 = vpop.f32.mrb[2].mxu1 }
 0x24a   :  { %v267_v45 = vpop.f32.mrb[3].mxu1  ;;  %v273_v47 = vadd.f32 %v1509_v43, %v1991_v44 }
 0x24b   :  { %v268_v46 = vadd.f32 %v267_v45, %v1989_v42 }
 0x24c   :  { %v279_v50 = vsel %vm70_vm3, %v273_v47, -inf }
 0x24d   :  { %v276_v48 = vsel %vm70_vm3, %v268_v46, -inf }
 0x24e   :  { %277 = vmax.xlane.f32.xlu0 %v276_v48 }
 0x251   :  { %v1523_v49 = vpop.f32.mrb[4].mxu1 }
 0x252   :  { %v475_v51 = vadd.f32 %v1523_v49, %v1991_v44  ;;  %v469_v52 = vpop.f32.mrb[5].mxu1  ;;  %280 = vmax.xlane.f32.xlu0 %v279_v50 }
 0x253   :  { %v470_v53 = vadd.f32 %v469_v52, %v1989_v42 }
 0x254   :  { %v481_v54 = vsel %vm70_vm3, %v475_v51, -inf }
 0x255   :  { %v478_v55 = vsel %vm70_vm3, %v470_v53, -inf }
 0x256   :  { %479 = vmax.xlane.f32.xlu1 %v478_v55  ;;  %482 = vmax.xlane.f32.xlu0 %v481_v54 }
 0x267   :  { %1709 = vrot.lane.b32.xlu1 %v1933_v17, %s1833_s1 }
 0x2db   :  { %v278_v56 = vpop.xlane.xlu0 %277 }
 0x2dc   :  { %v282_v57 = vsub.f32 %v268_v46, %v278_v56 }
 0x2de   :  { %v284_v58 = vmul.f32 1.442695, %v282_v57 }
 0x2df   :  { %v281_v59 = vpop.xlane.xlu0 %280 }
 0x2e0   :  { %1738 = vpow2.f32 %v284_v58  ;;  %v283_v60 = vsub.f32 %v273_v47, %v281_v59 }
 0x2e2   :  { %v286_v61 = vmul.f32 1.442695, %v283_v60 }
 0x2e3   :  { %v480_v62 = vpop.xlane.xlu1 %479  ;;  %v483_v63 = vpop.xlane.xlu0 %482 }
 0x2e4   :  { %1740 = vpow2.f32 %v286_v61  ;;  %v485_v0 = vsub.f32 %v475_v51, %v483_v63  ;;  %v484_v16 = vsub.f32 %v470_v53, %v480_v62 }
 0x2e6   :  { %v488_v1 = vmul.f32 1.442695, %v485_v0  ;;  %v486_v21 = vmul.f32 1.442695, %v484_v16 }
 0x2e7   :  { %v1710_v2 = vpop.permute.xlu1 %1709 }
 0x2e8   :  { %v1712_v3 = vunpack.i.h.bf16 %v1710_v2  ;;  %v1711_v4 = vunpack.i.l.bf16 %v1710_v2  ;;  %1742 = vpow2.f32 %v488_v1 }
 0x2e9   :  { %1744 = vpow2.f32 %v486_v21 }
 0x2ea   :  { %v1739_v6 = vpop.eup %1738  ;;  %v1614_v8 = vpack.c.bf16 %v1712_v3, %v1711_v4 }
 0x2eb   :  { %v288_v10 = vsel %vm70_vm3, %v1739_v6, 0.0 }
 0x2ec   :  { %1615 = vmatprep.subr.bf16.mxu0 %v1614_v8  ;;  %289 = vadd.xlane.f32.xlu1 %v288_v10 }
 0x2ed   :  { %1617 = vmatpush3.bf16.msra.mxu0 %v1614_v8 }
 0x2ee   :  { %v1741_v12 = vpop.eup %1740 }
 0x2ef   :  { %v291_v13 = vsel %vm70_vm3, %v1741_v12, 0.0 }
 0x2f0   :  { %292 = vadd.xlane.f32.xlu0 %v291_v13 }
 0x2f2   :  { %v1743_v14 = vpop.eup %1742 }
 0x2f3   :  { %v493_v15 = vsel %vm70_vm3, %v1743_v14, 0.0  ;;  %v1745_v23 = vpop.eup %1744 }
 0x2f4   :  { %494 = vadd.xlane.f32.xlu0 %v493_v15  ;;  %v490_v24 = vsel %vm70_vm3, %v1745_v23, 0.0 }
 0x2fd   :  { %1719 = vrot.lane.b32.xlu1 %v1933_v17, %s1834_s10 }
 0x30a   :  { %1714 = vrot.lane.b32.xlu0 %v1933_v17, %s1835_s11 }
 0x30e   :  { %600 = vrot.lane.b32.xlu0 %v1941_v19, %s1836_s12 }
 0x321   :  { %491 = vadd.xlane.f32.xlu1 %v490_v24 }
 0x332   :  { %598 = vrot.lane.b32.xlu1 %v1935_v18, %s1836_s12 }
 0x379   :  { %v290_v25 = vpop.xlane.xlu1 %289 }
 0x37a   :  { %1746 = vrcp.f32 %v290_v25 }
 0x37d   :  { %v293_v26 = vpop.xlane.xlu0 %292  ;;  %v1720_v29 = vpop.permute.xlu1 %1719 }
 0x37e   :  { %1748 = vrcp.f32 %v293_v26  ;;  %v1722_v33 = vunpack.i.h.bf16 %v1720_v29  ;;  %v1721_v34 = vunpack.i.l.bf16 %v1720_v29 }
 0x380   :  { %v1628_v41 = vpack.c.bf16 %v1722_v33, %v1721_v34 }
 0x381   :  { %v495_v27 = vpop.xlane.xlu0 %494 }
 0x382   :  { %1750 = vrcp.f32 %v495_v27 }
 0x384   :  { %v1747_v28 = vpop.eup %1746 }
 0x385   :  { %v295_v31 = vmul.f32 %v1747_v28, %v1739_v6  ;;  %v1715_v32 = vpop.permute.xlu0 %1714 }
 0x386   :  { %v1717_v35 = vunpack.i.h.bf16 %v1715_v32  ;;  %v1716_v36 = vunpack.i.l.bf16 %v1715_v32 }
 0x387   :  { %1514 = vmatprep.mubr.msk.f32.mxu0 %vm70_vm3, %v295_v31 }
 0x388   :  { %v1749_v37 = vpop.eup %1748  ;;  %v1624_v39 = vpack.c.bf16 %v1717_v35, %v1716_v36 }
 0x389   :  { %v297_v40 = vmul.f32 %v1749_v37, %v1741_v12  ;;  %v601_v50 = vpop.permute.xlu0 %600 }
 0x38a   :  { %1625 = vmatprep.subr.bf16.mxu0 %v1624_v39 }
 0x38b   :  { %1515 = vmatmul.mubr.msk.f32.vlgmr.msra.gmra.mrb[0].mxu0 %vm70_vm3, %v297_v40 }
 0x38c   :  { %1627 = vmatpush3.bf16.msra.mxu0 %v1624_v39  ;;  %v1751_v45 = vpop.eup %1750 }
 0x38d   :  { %1630 = vmatprep.subr.msk.bf16.mxu0 %vm1967_vm5, %v1628_v41  ;;  %v499_v48 = vmul.f32 %v1751_v45, %v1743_v14 }
 0x3ae   :  { %v492_v43 = vpop.xlane.xlu1 %491 }
 0x3af   :  { %1752 = vrcp.f32 %v492_v43 }
 0x3b2   :  { %v599_v49 = vpop.permute.xlu1 %598 }
 0x3b9   :  { %v1753_v46 = vpop.eup %1752 }
 0x3ba   :  { %v497_v47 = vmul.f32 %v1753_v46, %v1745_v23 }
 0x3bc   :  { %1528 = vmatprep.mubr.msk.f32.mxu0 %vm70_vm3, %v497_v47 }
 0x3bd   :  { %1529 = vmatmul.mubr.msk.f32.vlgmr.msra.gmra.mrb[2].mxu0 %vm70_vm3, %v499_v48 }
 0x3be   :  { %1633 = vmatpush3.bf16.xpose.msk.msra.mxu0 %vm1967_vm5, %v1628_v41  ;;  %1535 = vmatprep.mubr.msk.f32.mxu0 %vm190_vm1, %v599_v49 }
 0x3c5   :  { %1536 = vmatmul.mubr.msk.f32.vlgmr.msra.gmra.mrb[4].mxu0 %vm190_vm1, %v601_v50 }
 0x45e   :  { %v1516_v51 = vpop.f32.mrb[0].mxu0 }
 0x45f   :  { %386 = vst.msk [vmem:[#allocation2 + $0x8] sm:$0xff] %vm190_vm1, %v1516_v51  ;;  %v376_v52 = vpop.f32.mrb[1].mxu0 }
 0x460   :  { %385 = vst.msk [vmem:[#allocation2] sm:$0xff] %vm190_vm1, %v376_v52 }
 0x490   :  { %v2022_v53 = vpop.f32.mrb[2].mxu0 }
 0x491   :  { %v2024_v54 = vpop.f32.mrb[3].mxu0 }
 0x498   :  { %v1537_v55 = vpop.f32.mrb[4].mxu0 }
 0x499   :  { %v686_v56 = vadd.f32 %v1537_v55, %v1991_v44  ;;  %v680_v57 = vpop.f32.mrb[5].mxu0 }
 0x49a   :  { %v681_v58 = vadd.f32 %v680_v57, %v1989_v42 }
 0x49b   :  { %v692_v59 = vsel %vm70_vm3, %v686_v56, -inf }
 0x49c   :  { %693 = vmax.xlane.f32.xlu0 %v692_v59  ;;  %v689_v60 = vsel %vm70_vm3, %v681_v58, -inf }
 0x49d   :  { %690 = vmax.xlane.f32.xlu1 %v689_v60 }
 0x529   :  { %v694_v61 = vpop.xlane.xlu0 %693 }
 0x52a   :  { %v696_v62 = vsub.f32 %v686_v56, %v694_v61  ;;  %v691_v63 = vpop.xlane.xlu1 %690 }
 0x52b   :  { %v695_v0 = vsub.f32 %v681_v58, %v691_v63  ;;  %v1023_v63 = vld [vmem:[%s2164_s4 + $0x8] sm:$0xff] }
 0x52c   :  { %v699_v1 = vmul.f32 1.442695, %v696_v62  ;;  %v1022_v62 = vld [vmem:[%s2164_s4] sm:$0xff] }
 0x52d   :  { %v697_v2 = vmul.f32 1.442695, %v695_v0  ;;  %v1648_v0 = vpack.c.bf16 %v1023_v63, %v1022_v62 }
 0x52e   :  { %1754 = vpow2.f32 %v699_v1  ;;  %v1024_v1 = vld [vmem:[%s2164_s4 + $0x10] sm:$0xff] }
 0x52f   :  { %1756 = vpow2.f32 %v697_v2  ;;  %v1025_v2 = vld [vmem:[%s2164_s4 + $0x18] sm:$0xff] }
 0x538   :  { %v1755_v3 = vpop.eup %1754 }
 0x539   :  { %v1757_v4 = vpop.eup %1756  ;;  %v704_v6 = vsel %vm70_vm3, %v1755_v3, 0.0 }
 0x53a   :  { %705 = vadd.xlane.f32.xlu1 %v704_v6  ;;  %v701_v8 = vsel %vm70_vm3, %v1757_v4, 0.0 }
 0x53b   :  { %702 = vadd.xlane.f32.xlu0 %v701_v8 }
 0x54b   :  { %1729 = vrot.lane.b32.xlu1 %v1933_v17, %s1837_s13 }
 0x54f   :  { %809 = vrot.lane.b32.xlu1 %v1935_v18, %s1838_s14 }
 0x551   :  { %1724 = vrot.lane.b32.xlu0 %v1933_v17, %s1839_s17 }
 0x555   :  { %811 = vrot.lane.b32.xlu0 %v1941_v19, %s1838_s14 }
 0x5c7   :  { %v706_v10 = vpop.xlane.xlu1 %705 }
 0x5c8   :  { %1758 = vrcp.f32 %v706_v10  ;;  %v703_v12 = vpop.xlane.xlu0 %702 }
 0x5c9   :  { %1760 = vrcp.f32 %v703_v12 }
 0x5cb   :  { %v1730_v13 = vpop.permute.xlu1 %1729 }
 0x5cc   :  { %v1725_v14 = vpop.permute.xlu0 %1724  ;;  %v1732_v15 = vunpack.i.h.bf16 %v1730_v13  ;;  %v1731_v16 = vunpack.i.l.bf16 %v1730_v13 }
 0x5cd   :  { %v1727_v21 = vunpack.i.h.bf16 %v1725_v14  ;;  %v1726_v23 = vunpack.i.l.bf16 %v1725_v14  ;;  %v1028_v14 = vsub.s32 1, %v1924_v9 }
 0x5ce   :  { %v1638_v25 = vpack.c.bf16 %v1732_v15, %v1731_v16 }
 0x5cf   :  { %v1634_v24 = vpack.c.bf16 %v1727_v21, %v1726_v23  ;;  %v810_v28 = vpop.permute.xlu1 %809  ;;  %v1029_v15 = vrot.slane %v1930_v11, %v1028_v14 }
 0x5d0   :  { %v812_v29 = vpop.permute.xlu0 %811 }
 0x5d1   :  { %1635 = vmatprep.subr.bf16.mxu1 %v1634_v24 }
 0x5d2   :  { %v1759_v26 = vpop.eup %1758  ;;  %1637 = vmatpush3.bf16.msra.mxu1 %v1634_v24 }
 0x5d3   :  { %v1761_v18 = vpop.eup %1760  ;;  %1640 = vmatprep.subr.msk.bf16.mxu1 %vm1967_vm5, %v1638_v25  ;;  %v710_v27 = vmul.f32 %v1759_v26, %v1755_v3  ;;  %v1652_v3 = vpack.c.bf16 %v1025_v2, %v1024_v1 }
 0x5d4   :  { %v708_v19 = vmul.f32 %v1761_v18, %v1757_v4 }
 0x5d6   :  { %1542 = vmatprep.mubr.msk.f32.mxu1 %vm70_vm3, %v708_v19 }
 0x5d7   :  { %1543 = vmatmul.mubr.msk.f32.vlgmr.msra.gmra.mrb[6].mxu1 %vm70_vm3, %v710_v27 }
 0x5d8   :  { %1549 = vmatprep.mubr.msk.f32.mxu1 %vm190_vm1, %v810_v28 }
 0x5db   :  { %1643 = vmatpush3.bf16.xpose.msk.msra.mxu1 %vm1967_vm5, %v1638_v25 }
 0x5e2   :  { %1550 = vmatmul.mubr.msk.f32.vlgmr.msra.gmra.mrb[8].mxu1 %vm190_vm1, %v812_v29 }
 0x6aa   :  { %v1544_v31 = vpop.f32.mrb[6].mxu1 }
 0x6ab   :  { %v789_v32 = vpop.f32.mrb[7].mxu1 }
 0x6b5   :  { %v1551_v33 = vpop.f32.mrb[8].mxu1 }
 0x6b6   :  { %v897_v34 = vadd.f32 %v1551_v33, %v1991_v44  ;;  %v891_v35 = vpop.f32.mrb[9].mxu1 }
 0x6b7   :  { %v892_v36 = vadd.f32 %v891_v35, %v1989_v42 }
 0x6b8   :  { %v903_v37 = vsel %vm70_vm3, %v897_v34, -inf }
 0x6b9   :  { %904 = vmax.xlane.f32.xlu0 %v903_v37  ;;  %v900_v39 = vsel %vm70_vm3, %v892_v36, -inf  ;;  %v1153_v37 = vld [vmem:[%s2165_s5 + $0x8] sm:$0xff] }
 0x6ba   :  { %901 = vmax.xlane.f32.xlu1 %v900_v39 }
 0x746   :  { %v905_v40 = vpop.xlane.xlu0 %904 }
 0x747   :  { %v907_v30 = vsub.f32 %v897_v34, %v905_v40  ;;  %v902_v41 = vpop.xlane.xlu1 %901  ;;  %v1154_v40 = vld [vmem:[%s2165_s5 + $0x10] sm:$0xff] }
 0x748   :  { %v906_v43 = vsub.f32 %v892_v36, %v902_v41 }
 0x749   :  { %v910_v45 = vmul.f32 1.442695, %v907_v30  ;;  %v1155_v30 = vld [vmem:[%s2165_s5 + $0x18] sm:$0xff] }
 0x74a   :  { %v908_v46 = vmul.f32 1.442695, %v906_v43  ;;  %v1660_v41 = vpack.c.bf16 %v1155_v30, %v1154_v40  ;;  %v1243_v43 = vld [vmem:[%s2166_s6] sm:$0xff]  ;;  %v78_v40 = vsel %vm67_vm4, %v1986_v38, 0.0 }
 0x74b   :  { %1762 = vpow2.f32 %v910_v45  ;;  %v1244_v45 = vld [vmem:[%s2166_s6 + $0x8] sm:$0xff] }
 0x74c   :  { %1764 = vpow2.f32 %v908_v46  ;;  %v1245_v46 = vld [vmem:[%s2166_s6 + $0x10] sm:$0xff] }
 0x755   :  { %v1763_v47 = vpop.eup %1762 }
 0x756   :  { %v1765_v48 = vpop.eup %1764  ;;  %v915_v44 = vsel %vm70_vm3, %v1763_v47, 0.0 }
 0x757   :  { %916 = vadd.xlane.f32.xlu1 %v915_v44  ;;  %v912_v42 = vsel %vm70_vm3, %v1765_v48, 0.0 }
 0x758   :  { %913 = vadd.xlane.f32.xlu0 %v912_v42  ;;  %v1247_v42 = vld [vmem:[%s2166_s6 + $0x20] sm:$0xff] }
 0x768   :  { %589 = vrot.lane.b32.xlu1 %v2024_v54, %s1828_s16 }
 0x76c   :  { %591 = vrot.lane.b32.xlu1 %v2022_v53, %s1828_s16 }
 0x76e   :  { %1734 = vrot.lane.b32.xlu0 %v1933_v17, %s1840_s18 }
 0x770   :  { %802 = vrot.lane.b32.xlu1 %v1544_v31, %s1841_s19 }
 0x772   :  { %800 = vrot.lane.b32.xlu0 %v789_v32, %s1841_s19 }
 0x7e4   :  { %v917_v49 = vpop.xlane.xlu1 %916 }
 0x7e5   :  { %1766 = vrcp.f32 %v917_v49  ;;  %v914_v50 = vpop.xlane.xlu0 %913  ;;  %v1248_v49 = vld [vmem:[%s2166_s6 + $0x28] sm:$0xff] }
 0x7e6   :  { %1768 = vrcp.f32 %v914_v50  ;;  %v1672_v50 = vpack.c.bf16 %v1248_v49, %v1247_v42 }
 0x7e8   :  { %v590_v51 = vpop.permute.xlu1 %589 }
 0x7e9   :  { %596 = vst.msk [vmem:[#allocation2] sm:$0xff] %vm595_vm11, %v590_v51  ;;  %v1735_v52 = vpop.permute.xlu0 %1734 }
 0x7ea   :  { %v1737_v55 = vunpack.i.h.bf16 %v1735_v52  ;;  %v1736_v56 = vunpack.i.l.bf16 %v1735_v52 }
 0x7ec   :  { %v1644_v54 = vpack.c.bf16 %v1737_v55, %v1736_v56  ;;  %v592_v57 = vpop.permute.xlu1 %591 }
 0x7ed   :  { %597 = vst.msk [vmem:[#allocation2 + $0x8] sm:$0xff] %vm595_vm11, %v592_v57  ;;  %v801_v53 = vpop.permute.xlu0 %800 }
 0x7ee   :  { %807 = vst.msk [vmem:[#allocation2] sm:$0xff] %vm806_vm12, %v801_v53  ;;  %1645 = vmatprep.subr.bf16.mxu0 %v1644_v54  ;;  %v1142_v53 = vsub.s32 2, %v1924_v9 }
 0x7ef   :  { %v1767_v17 = vpop.eup %1766  ;;  %1647 = vmatpush3.bf16.msra.mxu0 %v1644_v54 }
 0x7f0   :  { %v1769_v58 = vpop.eup %1768  ;;  %v803_v59 = vpop.permute.xlu1 %802  ;;  %v921_v61 = vmul.f32 %v1767_v17, %v1763_v47  ;;  %1649 = vmatprep.subr.bf16.mxu0 %v1648_v0  ;;  %v1664_v47 = vpack.c.bf16 %v1244_v45, %v1243_v43  ;;  %v1148_v17 = vsub.s32 3, %v1924_v9  ;;  %v82_v45 = vsel %vm70_vm3, %v78_v40, 0.0 }
 0x7f1   :  { %808 = vst.msk [vmem:[#allocation2 + $0x8] sm:$0xff] %vm806_vm12, %v803_v59  ;;  %v919_v60 = vmul.f32 %v1769_v58, %v1765_v48  ;;  %v1246_v48 = vld [vmem:[%s2166_s6 + $0x18] sm:$0xff]  ;;  %v1143_v58 = vrot.slane %v1930_v11, %v1142_v53 }
 0x7f2   :  { %v1668_v44 = vpack.c.bf16 %v1246_v48, %v1245_v46 }
 0x7f3   :  { %1556 = vmatprep.mubr.msk.f32.mxu0 %vm70_vm3, %v919_v60 }
 0x7f4   :  { %1557 = vmatmul.mubr.msk.f32.vlgmr.msra.gmra.mrb[6].mxu0 %vm70_vm3, %v921_v61  ;;  %v1149_v61 = vrot.slane %v1930_v11, %v1148_v17 }
 0x7f5   :  { %1651 = vmatpush3.bf16.msra.mxu0 %v1648_v0 }
 0x7f6   :  { %1653 = vmatprep.subr.bf16.mxu0 %v1652_v3 }
 0x7f9   :  { %1655 = vmatpush3.bf16.msra.mxu0 %v1652_v3 }
 0x7fa   :  { %1665 = vmatprep.subr.bf16.mxu0 %v1664_v47 }
 0x8c7   :  { %v1558_v4 = vpop.f32.mrb[6].mxu0 }
 0x8c8   :  { %1013 = vrot.lane.b32.xlu1 %v1558_v4, %s1842_s3  ;;  %v1000_v6 = vpop.f32.mrb[7].mxu0  ;;  %v1249_v4 = vld [vmem:[%s2166_s6 + $0x30] sm:$0xff] }
 0x8c9   :  { %1011 = vrot.lane.b32.xlu0 %v1000_v6, %s1842_s3  ;;  %v1250_v6 = vld [vmem:[%s2166_s6 + $0x38] sm:$0xff]  ;;  %s1843_s6 = smov [#allocation6]  }
 0x8ca   :  { %s1386_s26 = sshll.u32 %s1843_s6, 4  ;;  %s1387_s26 = int_to_ptr.vmem [resolvable:$true] %s1386_s26 }
 0x8cb   :  { %s1800_s0 = scalar_lea.vmem %s1387_s26, 256  ;;  %p1805_p9 = scmp.lt.s32.totalorder %s1387_s26, %s1387_s26 }
 0x8cc   :  { %p1801_p8 = scmp.ne.s32.totalorder %s1387_s26, %s1800_s0  ;;  %p1806_p10 = scmp.lt.s32.totalorder %s1800_s0, %s1800_s0 }
 0x8ce   :  { %p1807_p11 = por %p1806_p10, %p1805_p9 }
 0x8d0   :  { %p1808_p12 = pnand %p1807_p11, %p1801_p8 }
 0x93a   :  { %v1014_v8 = vpop.permute.xlu1 %1013 }
 0x93b   :  { %1019 = vst.msk [vmem:[#allocation2 + $0x8] sm:$0xff] %vm1017_vm13, %v1014_v8  ;;  %v1012_v10 = vpop.permute.xlu0 %1011  ;;  %v1676_v8 = vpack.c.bf16 %v1250_v6, %v1249_v4 }
 0x93c   :  { %1018 = vst.msk [vmem:[#allocation2] sm:$0xff] %vm1017_vm13, %v1012_v10  ;;  %v1158_v10 = vsub.s32 4, %v1924_v9 }
 0x942   :  { %v1021_v13 = vld [vmem:[#allocation2 + $0x8] sm:$0xff] }
 0x943   :  { %v1020_v12 = vld [vmem:[#allocation2] sm:$0xff] }
 0x944   :  { %1567 = vmatprep.mubr.msk.f32.mxu0 %vm100_vm0, %v1020_v12  ;;  %v1159_v12 = vrot.slane %v1930_v11, %v1158_v10 }
 0x945   :  { %1568 = vmatmul.mubr.msk.f32.vlgmr.msra.gmra.mrb[8].mxu0 %vm100_vm0, %v1021_v13 }
 0x946   :  { %1667 = vmatpush3.bf16.msra.mxu0 %v1664_v47 }
 0x947   :  { %1669 = vmatprep.subr.bf16.mxu0 %v1668_v44 }
 0x94a   :  { %1671 = vmatpush3.bf16.msra.mxu0 %v1668_v44 }
 0x94b   :  { %1673 = vmatprep.subr.bf16.mxu0 %v1672_v50 }
 0x94e   :  { %1675 = vmatpush3.bf16.msra.mxu0 %v1672_v50  ;;  %v1368_v50 = vrot.slane %v1930_v11, %v1367_v20 }
 0x94f   :  { %1677 = vmatprep.subr.bf16.mxu0 %v1676_v8 }
 0x952   :  { %1679 = vmatpush3.bf16.msra.mxu0 %v1676_v8 }
 0xa18   :  { %v1569_v16 = vpop.f32.mrb[8].mxu0 }
 0xa19   :  { %v1108_v21 = vadd.f32 %v1569_v16, %v1029_v15  ;;  %v1102_v23 = vpop.f32.mrb[9].mxu0 }
 0xa1a   :  { %v1103_v24 = vadd.f32 %v1102_v23, %v1029_v15 }
 0xa1b   :  { %v1112_v25 = vadd.f32 %v1108_v21, %v1920_v7 }
 0xa1c   :  { %v1111_v26 = vadd.f32 %v1103_v24, %v1916_v5  ;;  %v1152_v5 = vld [vmem:[%s2165_s5] sm:$0xff]  ;;  %v1253_v24 = vsub.s32 5, %v1924_v9 }
 0xa1d   :  { %v1116_v18 = vsel %vm100_vm0, %v1112_v25, 0.0  ;;  %v1656_v39 = vpack.c.bf16 %v1153_v37, %v1152_v5 }
 0xa1e   :  { %1117 = vadd.xlane.f32.xlu1 %v1116_v18  ;;  %v1113_v19 = vsel %vm100_vm0, %v1111_v26, 0.0 }
 0xa1f   :  { %1114 = vadd.xlane.f32.xlu0 %v1113_v19  ;;  %1657 = vmatprep.subr.bf16.mxu1 %v1656_v39 }
 0xa20   :  { %1659 = vmatpush3.bf16.msra.mxu1 %v1656_v39 }
 0xa21   :  { %1661 = vmatprep.subr.bf16.mxu1 %v1660_v41 }
 0xa24   :  { %1663 = vmatpush3.bf16.msra.mxu1 %v1660_v41  ;;  %v77_v41 = vsel %vm66_vm2, %v1986_v38, 0.0  ;;  %v1373_v38 = vsub.s32 7, %v1924_v9 }
 0xa25   :  { %v79_v46 = vsel %vm70_vm3, %v77_v41, 0.0 }
 0xaab   :  { %v1118_v27 = vpop.xlane.xlu1 %1117 }
 0xaac   :  { %v1121_v28 = vmul.f32 0.03125, %v1118_v27  ;;  %v1115_v29 = vpop.xlane.xlu0 %1114 }
 0xaad   :  { %v1120_v31 = vmul.f32 0.03125, %v1115_v29 }
 0xaae   :  { %v1123_v32 = vsub.f32 %v1112_v25, %v1121_v28  ;;  %v1254_v25 = vrot.slane %v1930_v11, %v1253_v24 }
 0xaaf   :  { %v1122_v33 = vsub.f32 %v1111_v26, %v1120_v31 }
 0xab0   :  { %v1125_v36 = vmul.f32 %v1123_v32, %v1123_v32 }
 0xab1   :  { %v1124_v34 = vmul.f32 %v1122_v33, %v1122_v33 }
 0xab2   :  { %v1129_v7 = vsel %vm100_vm0, %v1125_v36, 0.0 }
 0xab3   :  { %v1126_v35 = vsel %vm100_vm0, %v1124_v34, 0.0 }
 0xab4   :  { %1127 = vadd.xlane.f32.xlu0 %v1126_v35 }
 0xab8   :  { %1130 = vadd.xlane.f32.xlu0 %v1129_v7 }
 0xb41   :  { %v1128_v51 = vpop.xlane.xlu0 %1127 }
 0xb42   :  { %v1132_v52 = vmul.f32 0.03125, %v1128_v51 }
 0xb44   :  { %v1134_v55 = vadd.f32 1e-05, %v1132_v52 }
 0xb45   :  { %v1131_v56 = vpop.xlane.xlu0 %1130 }
 0xb46   :  { %1770 = vrsqrt.f32 %v1134_v55  ;;  %v1133_v54 = vmul.f32 0.03125, %v1131_v56  ;;  %v1374_v56 = vrot.slane %v1930_v11, %v1373_v38 }
 0xb48   :  { %v1135_v57 = vadd.f32 1e-05, %v1133_v54 }
 0xb4a   :  { %1772 = vrsqrt.f32 %v1135_v57 }
 0xb50   :  { %v1771_v59 = vpop.eup %1770 }
 0xb51   :  { %v1138_v60 = vmul.f32 %v1771_v59, %v1122_v33 }
 0xb53   :  { %v1144_v62 = vmul.f32 %v1143_v58, %v1138_v60 }
 0xb54   :  { %v1773_v63 = vpop.eup %1772 }
 0xb55   :  { %v1139_v0 = vmul.f32 %v1773_v63, %v1123_v32  ;;  %v1150_v1 = vadd.f32 %v1149_v61, %v1144_v62 }
 0xb57   :  { %v1145_v2 = vmul.f32 %v1143_v58, %v1139_v0  ;;  %1578 = vmatprep.mubr.msk.f32.mxu1 %vm100_vm0, %v1150_v1 }
 0xb59   :  { %v1151_v3 = vadd.f32 %v1149_v61, %v1145_v2 }
 0xb5b   :  { %1579 = vmatmul.mubr.msk.f32.vlgmr.msra.gmra.mrb[10].mxu1 %vm100_vm0, %v1151_v3 }
 0xc2e   :  { %v1580_v13 = vpop.f32.mrb[10].mxu1 }
 0xc2f   :  { %v1238_v14 = vadd.f32 %v1580_v13, %v1159_v12  ;;  %v1232_v15 = vpop.f32.mrb[11].mxu1 }
 0xc30   :  { %v1233_v16 = vadd.f32 %v1232_v15, %v1159_v12 }
 0xc31   :  { %v1242_v23 = vmax.f32 %v1238_v14, 0.0 }
 0xc32   :  { %v1241_v21 = vmax.f32 %v1233_v16, 0.0 }
 0xc34   :  { %1597 = vmatprep.mubr.msk.f32.mxu0 %vm1255_vm14, %v1241_v21 }
 0xc35   :  { %1598 = vmatmul.mubr.msk.f32.vlgmr.msra.gmra.mrb[10].mxu0 %vm1255_vm14, %v1242_v23 }
 0xd08   :  { %v1599_v26 = vpop.f32.mrb[10].mxu0 }
 0xd09   :  { %v1334_v18 = vadd.f32 %v1599_v26, %v1254_v25  ;;  %v1328_v19 = vpop.f32.mrb[11].mxu0 }
 0xd0a   :  { %v1329_v27 = vadd.f32 %v1328_v19, %v1254_v25 }
 0xd0b   :  { %v1338_v28 = vadd.f32 %v1334_v18, %v1151_v3 }
 0xd0c   :  { %v1337_v29 = vadd.f32 %v1329_v27, %v1150_v1 }
 0xd0d   :  { %v1342_v31 = vsel %vm100_vm0, %v1338_v28, 0.0 }
 0xd0e   :  { %1343 = vadd.xlane.f32.xlu0 %v1342_v31  ;;  %v1339_v32 = vsel %vm100_vm0, %v1337_v29, 0.0 }
 0xd0f   :  { %1340 = vadd.xlane.f32.xlu1 %v1339_v32 }
 0xd9b   :  { %v1344_v33 = vpop.xlane.xlu0 %1343 }
 0xd9c   :  { %v1346_v34 = vmul.f32 0.03125, %v1344_v33  ;;  %v1341_v35 = vpop.xlane.xlu1 %1340 }
 0xd9d   :  { %v1345_v36 = vmul.f32 0.03125, %v1341_v35 }
 0xd9e   :  { %v1348_v7 = vsub.f32 %v1338_v28, %v1346_v34 }
 0xd9f   :  { %v1347_v5 = vsub.f32 %v1337_v29, %v1345_v36 }
 0xda0   :  { %v1350_v37 = vmul.f32 %v1348_v7, %v1348_v7 }
 0xda1   :  { %v1349_v39 = vmul.f32 %v1347_v5, %v1347_v5 }
 0xda2   :  { %v1354_v30 = vsel %vm100_vm0, %v1350_v37, 0.0 }
 0xda3   :  { %1355 = vadd.xlane.f32.xlu0 %v1354_v30  ;;  %v1351_v43 = vsel %vm100_vm0, %v1349_v39, 0.0 }
 0xda4   :  { %1352 = vadd.xlane.f32.xlu1 %v1351_v43 }
 0xda7   :  { %83 = vadd.xlane.f32.xlu0 %v82_v45 }
 0xda8   :  { %80 = vadd.xlane.f32.xlu1 %v79_v46 }
 0xe30   :  { %v1356_v47 = vpop.xlane.xlu0 %1355 }
 0xe31   :  { %v1358_v22 = vmul.f32 0.03125, %v1356_v47  ;;  %v1353_v48 = vpop.xlane.xlu1 %1352 }
 0xe32   :  { %v1357_v44 = vmul.f32 0.03125, %v1353_v48 }
 0xe33   :  { %v1360_v42 = vadd.f32 1e-05, %v1358_v22 }
 0xe34   :  { %v1359_v49 = vadd.f32 1e-05, %v1357_v44  ;;  %v84_v53 = vpop.xlane.xlu0 %83 }
 0xe35   :  { %1774 = vrsqrt.f32 %v1360_v42  ;;  %v81_v59 = vpop.xlane.xlu1 %80 }
 0xe36   :  { %1776 = vrsqrt.f32 %v1359_v49 }
 0xe3f   :  { %v1775_v51 = vpop.eup %1774 }
 0xe40   :  { %v1777_v52 = vpop.eup %1776  ;;  %v1364_v55 = vmul.f32 %v1775_v51, %v1348_v7 }
 0xe41   :  { %v1363_v54 = vmul.f32 %v1777_v52, %v1347_v5 }
 0xe42   :  { %v1370_v57 = vmul.f32 %v1368_v50, %v1364_v55 }
 0xe43   :  { %v1369_v17 = vmul.f32 %v1368_v50, %v1363_v54 }
 0xe44   :  { %v1376_v58 = vadd.f32 %v1374_v56, %v1370_v57 }
 0xe45   :  { %v1375_v60 = vadd.f32 %v1374_v56, %v1369_v17 }
 0xe46   :  { %v1378_v61 = vmul.f32 %v1376_v58, %v84_v53 }
 0xe47   :  { %v1377_v62 = vmul.f32 %v1375_v60, %v81_v59 }
 0xe48   :  { %1380 = vst.msk [vmem:[#allocation6 + $0x8] sm:$0xff] %vm100_vm0, %v1378_v61 }
 0xe49   :  { %1379 = vst.msk [vmem:[#allocation6] sm:$0xff] %vm100_vm0, %v1377_v62 }
 0xe4a   :  { %1811 = shalt.err (!%p1808_p12)
}
 0xe4b   :  { %s1812_s27 = scalar_lea.hbm %s2168_s8, 256 }
 0xe4c   :  { %p1813_p13 = scmp.ne.s32.totalorder %s2168_s8, %s1812_s27  ;;  %p1816_p0 = scmp.lt.u32.totalorder %s1812_s27, %s2168_s8 }
 0xe4e   :  { %p1818_p1 = pnand %p1816_p0, %p1813_p13 }
 0xe50   :  { %1821 = shalt.err (!%p1818_p1)
}
 0xe51   :  { %1392 = dma.vmem_to_hbm [thread:$0]  %s1387_s26, 256, %s2168_s8, [#allocation5], %s1827_s15, %s1827_s15, %s1828_s16  }
 0xe52   :  { %1824 = dma.done.wait [#allocation5], 256  }
 0xe53   :  { %1825 = vsyncadd [#allocation5], 4294967040 }
 0xe54   :  { %1396 = vsyncpa [#allocation4], 1 }
 0xe55   :  { %1397 = vsyncpa [#allocation5], 1 }

</bundles_post_ra>
